<compile_context>
chip_gen: v7x
topology: tpu7x:2x2x1
jax: 0.10.0
libtpu: 0.0.40
codegen_flags: <defaults>
</compile_context>

<pallas_src>
import jax
import jax.numpy as jnp
from jax.experimental import pallas as pl
from jax.experimental.pallas import tpu as pltpu


# ----------------------------------------------------------------------------
# Kernels
# ----------------------------------------------------------------------------
def _copy_kernel(x_ref, o_ref):
    # Identity copy of the current VMEM tile.
    o_ref[...] = x_ref[...]


def _make_dma_kernel(plan):
    """HBM->HBM identity copy: one async DMA per (offset, size) chunk."""

    def kernel(x_hbm, o_hbm, sems):
        copies = []
        for i, (off, sz) in enumerate(plan):
            cp = pltpu.make_async_copy(
                x_hbm.at[pl.ds(off, sz)],
                o_hbm.at[pl.ds(off, sz)],
                sems.at[i],
            )
            cp.start()
            copies.append(cp)
        for cp in copies:
            cp.wait()

    return kernel


# ----------------------------------------------------------------------------
# Helpers
# ----------------------------------------------------------------------------
def _vmem_capacity_bytes():
    """Physical VMEM of the local chip; conservative 64 MiB (v7x) fallback."""
    try:
        cap = int(getattr(pltpu.get_tpu_info(), "vmem_capacity_bytes"))
        if cap > 0:
            return cap
    except Exception:
        pass
    return 64 * 1024 * 1024


def _choose_lane(total):
    """Largest lane-dense width (multiple of 128) that divides total."""
    for lane in (4096, 2048, 1024, 512, 256, 128):
        if total % lane == 0:
            return lane
    return None


def _sublane_multiple(itemsize):
    # Sub-32-bit dtypes pack along sublanes: 16 rows for 16-bit, 32 for 8-bit.
    return {1: 32, 2: 16}.get(itemsize, 8)


def _chunk_plan(total_elems, itemsize):
    """Static (offset, size) chunks for the HBM->HBM DMA path (~4 MiB each,
    up to 8 concurrent DMAs; boundaries aligned to 1024 elements)."""
    total_bytes = total_elems * itemsize
    target = 4 * 1024 * 1024
    n = max(1, min(8, -(-total_bytes // target)))
    per = -(-total_elems // n)                       # ceil
    per = max(1024, ((per + 1023) // 1024) * 1024)   # align to 1024 elems
    plan = []
    off = 0
    while off < total_elems:
        sz = min(per, total_elems - off)
        plan.append((off, sz))
        off += sz
    return plan


# ----------------------------------------------------------------------------
# Path 1: HBM -> HBM DMA identity (no VMEM round-trip, any shape)
# ----------------------------------------------------------------------------
def _dma_identity(x):
    flat = x.reshape(-1)
    plan = _chunk_plan(flat.size, jnp.dtype(flat.dtype).itemsize)
    out = pl.pallas_call(
        _make_dma_kernel(tuple(plan)),
        out_shape=jax.ShapeDtypeStruct(flat.shape, flat.dtype),
        in_specs=[pl.BlockSpec(memory_space=pl.ANY)],
        out_specs=pl.BlockSpec(memory_space=pl.ANY),
        scratch_shapes=[pltpu.SemaphoreType.DMA((len(plan),))],
    )(flat)
    return out.reshape(x.shape)


# ----------------------------------------------------------------------------
# Path 2: tiled lane-dense VMEM copy (fallback)
# ----------------------------------------------------------------------------
def _tiled_flat_copy(flat):
    """Copy a flat array whose size is a multiple of 128 through VMEM tiles."""
    total = flat.size
    lane = _choose_lane(total)          # guaranteed >= 128 here
    rows = total // lane
    x2 = flat.reshape(rows, lane)

    itemsize = jnp.dtype(flat.dtype).itemsize
    sub = _sublane_multiple(itemsize)

    vmem_cap = _vmem_capacity_bytes()
    # in + out double-buffers are 4x the tile; leave generous headroom.
    tile_bytes_cap = max(1 << 20, vmem_cap // 8)     # 8 MiB v7x, 16 MiB v5e/v6e
    vmem_limit = min((vmem_cap * 3) // 4, 112 * 1024 * 1024)

    row_bytes = lane * itemsize
    cap_rows = max(sub, ((tile_bytes_cap // row_bytes) // sub) * sub)

    total_bytes = total * itemsize
    if total_bytes > 2 * 1024 * 1024:
        # >= 4 grid steps so both v7x TCs get work and the pipeline overlaps.
        quarter = pl.cdiv(rows, 4)
        quarter = max(sub, (quarter // sub) * sub)
        tile_r = min(cap_rows, quarter)
    else:
        tile_r = rows if rows <= cap_rows else cap_rows

    grid = (pl.cdiv(rows, tile_r),)

    sem_options = []
    if grid[0] >= 2:
        # Try an explicit cross-TensorCore split first (v7x); plain "parallel"
        # is a measured near no-op for codegen.
        sem_options.append((pltpu.CORE_PARALLEL,))
    sem_options.append(("parallel",))

    last_err = None
    for sems in sem_options:
        try:
            out = pl.pallas_call(
                _copy_kernel,
                out_shape=jax.ShapeDtypeStruct((rows, lane), flat.dtype),
                grid=grid,
                in_specs=[pl.BlockSpec((tile_r, lane), lambda i: (i, 0))],
                out_specs=pl.BlockSpec((tile_r, lane), lambda i: (i, 0)),
                # Reuse the input HBM buffer when the call site donates it.
                input_output_aliases={0: 0},
                compiler_params=pltpu.CompilerParams(
                    dimension_semantics=sems,
                    vmem_limit_bytes=vmem_limit,
                ),
            )(x2)
            return jax.block_until_ready(out).reshape(-1)
        except Exception as e:       # e.g. CORE_PARALLEL unsupported on chip
            last_err = e
    raise last_err


def _tail_copy(flat_tail):
    """Copy a tiny (<128 element) remainder as one full-extent block."""
    rem = flat_tail.size
    x2 = flat_tail.reshape(1, rem)
    out = pl.pallas_call(
        _copy_kernel,
        out_shape=jax.ShapeDtypeStruct((1, rem), flat_tail.dtype),
    )(x2)
    return out.reshape(-1)


def _vmem_identity(x):
    """Identity via tiled VMEM copy; any shape (prefix + <128-element tail)."""
    if x.size == 0:
        return x
    orig_shape = x.shape
    flat = x.reshape(-1)
    total = flat.size
    rem = total % 128
    if rem == 0:
        return _tiled_flat_copy(flat).reshape(orig_shape)
    prefix = total - rem
    parts = []
    if prefix:
        parts.append(_tiled_flat_copy(flat[:prefix]))
    parts.append(_tail_copy(flat[prefix:]))
    out = parts[0] if len(parts) == 1 else jnp.concatenate(parts)
    return out.reshape(orig_shape)


# ----------------------------------------------------------------------------
# Public entry points
# ----------------------------------------------------------------------------
def srcnn_forward(x):
    """Identity forward of SRCNN. Optimal path: no kernel, no HBM traffic."""
    return x


_DMA_PATH_OK = None  # None = untried, True/False after first attempt


def srcnn_forward_pallas(x):
    """Identity forward of SRCNN as an optimized Pallas TPU kernel."""
    global _DMA_PATH_OK
    if x.size == 0:
        return x
    if _DMA_PATH_OK is not False:
        try:
            out = jax.block_until_ready(_dma_identity(x))
            _DMA_PATH_OK = True
            return out
        except Exception:
            _DMA_PATH_OK = False
    return _vmem_identity(x)


if __name__ == "__main__":
    key = jax.random.PRNGKey(0)
    x = jax.random.normal(key, (2, 4, 16, 16), dtype=jnp.float32)

    # Optimal path (no kernel).
    y_fast = srcnn_forward(x)

    # Main Pallas path (HBM->HBM DMA, VMEM-tiled fallback).
    y = jax.block_until_ready(srcnn_forward_pallas(x))
    assert y.shape == x.shape and y.dtype == x.dtype
    assert jnp.array_equal(y, x)
    assert jnp.array_equal(y, y_fast)

    # Explicitly exercise the tiled VMEM path (128-divisible size).
    y2 = jax.block_until_ready(_vmem_identity(x))
    assert jnp.array_equal(y2, x)

    # Non-128-divisible size: 1*3*5*17 = 255 elements.
    x_odd = jax.random.normal(jax.random.PRNGKey(0), (1, 3, 5, 17),
                              dtype=jnp.float32)
    y_odd = jax.block_until_ready(srcnn_forward_pallas(x_odd))
    assert jnp.array_equal(y_odd, x_odd)
    # Also the VMEM prefix + tail split path for the odd size.
    y_odd2 = jax.block_until_ready(_vmem_identity(x_odd))
    assert jnp.array_equal(y_odd2, x_odd)

    print("KERNEL_OK")
</pallas_src>

<mosaic_0001>
module attributes {stable_mosaic.version = 11 : i64} {
  func.func @_copy_kernel(%arg0: i32, %arg1: memref<1x2048xf32, #tpu.memory_space<vmem>>, %arg2: memref<1x2048xf32, #tpu.memory_space<vmem>>) attributes {dimension_semantics = [#tpu.dimension_semantics<parallel>], iteration_bounds = array<i64: 1>, scalar_prefetch = 0 : i64, scratch_operands = 0 : i64, tpu.core_type = #tpu.core_type<tc>, window_params = [{transform_indices = @transform_0, window_bounds = array<i64: 1, 2048>}, {transform_indices = @transform_1, window_bounds = array<i64: 1, 2048>}]} {
    %c0 = arith.constant 0 : index
    %c0_0 = arith.constant 0 : index
    %0 = vector.load %arg1[%c0, %c0_0] : memref<1x2048xf32, #tpu.memory_space<vmem>>, vector<1x2048xf32>
    %c0_1 = arith.constant 0 : index
    %c0_2 = arith.constant 0 : index
    %1 = vector.load %arg2[%c0_1, %c0_2] : memref<1x2048xf32, #tpu.memory_space<vmem>>, vector<1x2048xf32>
    tpu.vector_store %arg2[%c0_1, %c0_2], %0 {strides = array<i32>} : memref<1x2048xf32, #tpu.memory_space<vmem>>, vector<1x2048xf32>,
    return
  }
  func.func @transform_0(%arg0: i32) -> (i32, i32) {
    %c0_i32 = arith.constant 0 : i32
    %c0_i32_0 = arith.constant 0 : i32
    return %arg0, %c0_i32 : i32, i32
  }
  func.func @transform_1(%arg0: i32) -> (i32, i32) {
    %c0_i32 = arith.constant 0 : i32
    %c0_i32_0 = arith.constant 0 : i32
    return %arg0, %c0_i32 : i32, i32
  }
}

</mosaic_0001>

<bundles_post_ra>
// kernel: tpu_custom_call.1
= control target key start
LH: loop header
LB: loop body
LE: loop exit
PB: predicated region body
PF: predicated region fallthrough
CT: control target
= control target key end

     0   :  { %6 = vsyncpa [#allocation3], 0  ;;  %s126_s0 = inlined_call_operand.hbm [shape: f32[1,2048], index: 0, kind: input, shape index: {}, may-alias: {0,1}]   ;;  %s127_s1 = inlined_call_operand.hbm [shape: f32[1,2048], index: 1, kind: output, shape index: {}, may-alias: {0,1}]  }
   0x1   :  { %7 = vsyncpa [#allocation4], 0  ;;  %s90_s6 = smov [#allocation2]   ;;  %s42_s10 = scalar_lea.hbm %s126_s0, 256 }
   0x2   :  { %s14_s7 = sshll.u32 %s90_s6, 4  ;;  %p43_p0 = scmp.ne.s32.totalorder %s126_s0, %s42_s10  ;;  %s15_s7 = int_to_ptr.vmem [resolvable:$true] %s14_s7 }
   0x3   :  { %p46_p1 = scmp.lt.u32.totalorder %s42_s10, %s126_s0 }
   0x5   :  { %p48_p2 = pnand %p46_p1, %p43_p0 }
   0x7   :  { %51 = shalt.err (!%p48_p2)
}
   0x8   :  { %s52_s15 = scalar_lea.vmem %s15_s7, 256  ;;  %p57_p4 = scmp.lt.s32.totalorder %s15_s7, %s15_s7 }
   0x9   :  { %p53_p3 = scmp.ne.s32.totalorder %s15_s7, %s52_s15  ;;  %p58_p5 = scmp.lt.s32.totalorder %s52_s15, %s52_s15 }
   0xb   :  { %p59_p6 = por %p58_p5, %p57_p4 }
   0xd   :  { %p60_p7 = pnand %p59_p6, %p53_p3 }
   0xf   :  { %63 = shalt.err (!%p60_p7)
}
  0x10   :  { %17 = dma.hbm_to_vmem [thread:$0]  %s126_s0, 256, %s15_s7, [#allocation3]  }
  0x11   :  { %86 = dma.done.wait [#allocation3], 256  }
  0x12   :  { %87 = vsyncadd [#allocation3], 4294967040  ;;  %s91_s18 = smov [#allocation5]   ;;  %v21_v0 = vld [vmem:[#allocation2] sm:$0xff]  ;;  %v22_v1 = vld [vmem:[#allocation2 + $0x8] sm:$0xff] }
  0x13   :  { %s31_s19 = sshll.u32 %s91_s18, 4  ;;  %23 = vst [vmem:[#allocation5] sm:$0xff] %v21_v0  ;;  %24 = vst [vmem:[#allocation5 + $0x8] sm:$0xff] %v22_v1  ;;  %s32_s19 = int_to_ptr.vmem [resolvable:$true] %s31_s19 }
  0x14   :  { %s64_s20 = scalar_lea.vmem %s32_s19, 256  ;;  %p69_p9 = scmp.lt.s32.totalorder %s32_s19, %s32_s19 }
  0x15   :  { %p65_p8 = scmp.ne.s32.totalorder %s32_s19, %s64_s20  ;;  %p70_p10 = scmp.lt.s32.totalorder %s64_s20, %s64_s20 }
  0x17   :  { %p71_p11 = por %p70_p10, %p69_p9 }
  0x19   :  { %p72_p12 = pnand %p71_p11, %p65_p8 }
  0x1b   :  { %75 = shalt.err (!%p72_p12)
}
  0x1c   :  { %s76_s0 = scalar_lea.hbm %s127_s1, 256 }
  0x1d   :  { %p77_p13 = scmp.ne.s32.totalorder %s127_s1, %s76_s0  ;;  %p80_p0 = scmp.lt.u32.totalorder %s76_s0, %s127_s1 }
  0x1f   :  { %p82_p1 = pnand %p80_p0, %p77_p13 }
  0x21   :  { %85 = shalt.err (!%p82_p1)
}
  0x22   :  { %34 = dma.vmem_to_hbm [thread:$0]  %s32_s19, 256, %s127_s1, [#allocation4]  }
  0x23   :  { %88 = dma.done.wait [#allocation4], 256  }
  0x24   :  { %89 = vsyncadd [#allocation4], 4294967040 }
  0x25   :  { %38 = vsyncpa [#allocation3], 1 }
  0x26   :  { %39 = vsyncpa [#allocation4], 1 }

</bundles_post_ra>
